<compile_context>
chip_gen: v5e
topology: v5e:2x2
jax: 0.10.0
libtpu: 0.0.40
codegen_flags: <defaults>
</compile_context>

<pallas_src>
import jax
import jax.numpy as jnp
from jax import lax
from jax.experimental import pallas as pl
from jax.experimental.pallas import tpu as pltpu


def _linear_decoder_kernel(z_ref, w_ref, y_ref):
    """y = z @ W.T with W kept in PyTorch (out, in) layout.

    z_ref: (block_b, latent_dim)   w_ref: (target_dim, latent_dim)
    y_ref: (block_b, target_dim)
    """
    z = z_ref[...]
    w = w_ref[...]
    # Contract latent_dim (last dim of both operands) -> MXU matmul, f32 acc.
    y = lax.dot_general(
        z, w,
        dimension_numbers=(((1,), (1,)), ((), ())),
        preferred_element_type=jnp.float32,
    )
    y_ref[...] = y.astype(y_ref.dtype)


def linear_variational_decoder_forward(z, w_dec, *, block_b=128):
    """Forward pass of LinearVariationalDecoder.

    z:     (B, latent_dim)  float
    w_dec: (target_dim, latent_dim)  -- decoder.l.weight (PyTorch layout, no bias)
    returns y: (B, target_dim) float32
    """
    B, L = z.shape
    T, L2 = w_dec.shape
    assert L == L2, "latent_dim mismatch between z and decoder weight"

    z = z.astype(jnp.float32)
    w_dec = w_dec.astype(jnp.float32)

    # One grid step handles block_b rows; pad the batch so the grid tiles evenly.
    block_b = max(1, min(block_b, B))
    pad = (-B) % block_b
    if pad:
        z = jnp.pad(z, ((0, pad), (0, 0)))
    Bp = B + pad
    grid = (Bp // block_b,)

    y = pl.pallas_call(
        _linear_decoder_kernel,
        out_shape=jax.ShapeDtypeStruct((Bp, T), jnp.float32),
        grid_spec=pltpu.PrefetchScalarGridSpec(
            num_scalar_prefetch=0,
            grid=grid,
            in_specs=[
                # z: tiled along batch; latent dim stays whole (= full array dim).
                pl.BlockSpec((block_b, L), lambda i: (i, 0)),
                # weight: whole array, same block for every grid step (stays resident).
                pl.BlockSpec((T, L), lambda i: (0, 0)),
            ],
            out_specs=pl.BlockSpec((block_b, T), lambda i: (i, 0)),
        ),
        compiler_params=pltpu.CompilerParams(
            # Batch rows are independent -> shard across TensorCores (v7x megacore).
            dimension_semantics=("parallel",),
        ),
    )(z, w_dec)

    if pad:
        y = y[:B]
    return y


if __name__ == "__main__":
    # Small, deterministic problem: many rows in one call (amortized launch),
    # lane-dense target_dim (multiple of 128) for unmasked stores.
    B, latent_dim, target_dim = 256, 16, 128

    key = jax.random.PRNGKey(0)
    k_z, k_w = jax.random.split(key)
    z = jax.random.normal(k_z, (B, latent_dim), jnp.float32)
    # decoder.l.weight, PyTorch (target_dim, latent_dim) layout, no bias.
    w_dec = 0.1 * jax.random.normal(k_w, (target_dim, latent_dim), jnp.float32)

    y = linear_variational_decoder_forward(z, w_dec)
    jax.block_until_ready(y)

    # Correctness check against a pure-JAX reference of the PyTorch forward.
    y_ref = z @ w_dec.T
    assert y.shape == (B, target_dim)
    assert jnp.allclose(y, y_ref, atol=1e-5, rtol=1e-5)

    print("KERNEL_OK")
</pallas_src>

<mosaic_0001>
module attributes {stable_mosaic.version = 11 : i64} {
  func.func @_linear_decoder_kernel(%arg0: i32, %arg1: memref<128x16xf32, #tpu.memory_space<vmem>>, %arg2: memref<128x16xf32, #tpu.memory_space<vmem>>, %arg3: memref<128x128xf32, #tpu.memory_space<vmem>>) attributes {dimension_semantics = [#tpu.dimension_semantics<parallel>], iteration_bounds = array<i64: 2>, scalar_prefetch = 0 : i64, scratch_operands = 0 : i64, tpu.core_type = #tpu.core_type<tc>, window_params = [{transform_indices = @transform_0, window_bounds = array<i64: 128, 16>}, {pipeline_mode = #tpu.pipeline_mode<synchronous>, transform_indices = @transform_1, window_bounds = array<i64: 128, 16>}, {transform_indices = @transform_2, window_bounds = array<i64: 128, 128>}]} {
    %c0 = arith.constant 0 : index
    %c0_0 = arith.constant 0 : index
    %0 = vector.load %arg1[%c0, %c0_0] : memref<128x16xf32, #tpu.memory_space<vmem>>, vector<128x16xf32>
    %c0_1 = arith.constant 0 : index
    %c0_2 = arith.constant 0 : index
    %1 = vector.load %arg2[%c0_1, %c0_2] : memref<128x16xf32, #tpu.memory_space<vmem>>, vector<128x16xf32>
    %cst = arith.constant dense<0.000000e+00> : vector<128x128xf32>
    %2 = tpu.matmul %0, %1, %cst {dimension_numbers = #tpu.dot_dimension_numbers<[1], [1], [0], [0], [0, 0, 1, 0], [], []>} : vector<128x16xf32>, vector<128x16xf32>, vector<128x128xf32> -> vector<128x128xf32>
    %c0_3 = arith.constant 0 : index
    %c0_4 = arith.constant 0 : index
    %3 = vector.load %arg3[%c0_3, %c0_4] : memref<128x128xf32, #tpu.memory_space<vmem>>, vector<128x128xf32>
    tpu.vector_store %arg3[%c0_3, %c0_4], %2 {strides = array<i32>} : memref<128x128xf32, #tpu.memory_space<vmem>>, vector<128x128xf32>,
    return
  }
  func.func @transform_0(%arg0: i32) -> (i32, i32) {
    %c0_i32 = arith.constant 0 : i32
    %c0_i32_0 = arith.constant 0 : i32
    return %arg0, %c0_i32 : i32, i32
  }
  func.func @transform_1(%arg0: i32) -> (i32, i32) {
    %c0_i32 = arith.constant 0 : i32
    %c0_i32_0 = arith.constant 0 : i32
    %c0_i32_1 = arith.constant 0 : i32
    return %c0_i32, %c0_i32_0 : i32, i32
  }
  func.func @transform_2(%arg0: i32) -> (i32, i32) {
    %c0_i32 = arith.constant 0 : i32
    %c0_i32_0 = arith.constant 0 : i32
    return %arg0, %c0_i32 : i32, i32
  }
}

</mosaic_0001>

<bundles_post_ra>
// kernel: tpu_custom_call.1
= control target key start
LH: loop header
LB: loop body
LE: loop exit
PB: predicated region body
PF: predicated region fallthrough
CT: control target
= control target key end

     0   :  { %7 = vsyncpa [#allocation3], 0  ;;  %s901_s0 = inlined_call_operand.vmem [shape: f32[256,16], index: 0, kind: input, shape index: {}]   ;;  %s902_s1 = inlined_call_operand.vmem [shape: f32[128,16], index: 1, kind: input, shape index: {}]   ;;  %s903_s2 = inlined_call_operand.hbm [shape: f32[256,128], index: 2, kind: output, shape index: {}]  }
   0x1   :  { %9 = vsyncpa [#allocation3 + $0x1], 0  ;;  %s648_s9 = smov 0   ;;  %s650_s10 = smov 0  }
   0x2   :  { %s652_s11 = smov 0   ;;  %s654_s12 = smov 0  }
   0x3 LB: > { %s669_s13 = sadd.s32 4294967295, %s629_s12   ;;  %s433_s14 = sadd.s32 4294967294, %s629_s12   ;;  %s629_s12 = sphi %s654_s12, %s909_s12   ;;  %s625_s11 = sphi %s652_s11, %s908_s11   ;;  %s621_s10 = sphi %s650_s10, %s907_s10   ;;  %s617_s9 = sphi %s648_s9, %s906_s9  }
   0x4   : > { %s673_s15 = sadd.s32 1, %s629_s12   ;;  %s69_s16 = sadd.s32 1, %s625_s11 }
   0x5   : > { %s66_s17 = ssub.s32 %s629_s12, %s673_s15  ;;  %p79_p0 = scmp.ne.s32.totalorder %s625_s11, %s621_s10 }
   0x6   : > { %p67_p1 = scmp.eq.s32.totalorder %s66_s17, 0  ;;  %p80_p2 = scmp.eq.s32.totalorder %s669_s13, 1 }
   0x7   : > { %p85_p3 = scmp.ne.s32.totalorder %s621_s10, %s617_s9  ;;  %p86_p4 = scmp.eq.s32.totalorder %s433_s14, 1 }
   0x8   : > { %s684_s18 = scalar_select %p67_p1, %s625_s11, %s69_s16  }
   0x9   : > { %p686_p5 = por %p80_p2, %p79_p0  ;;  %p690_p6 = por %p86_p4, %p85_p3 }
   0xa   : > { %p436_p7 = scmp.ge.s32.totalorder %s629_s12, 1  ;;  %p116_p8 = scmp.lt.s32.totalorder %s629_s12, 3 }
   0xc   : > { %p117_p9 = pnand %p436_p7, %p116_p8 }
   0xd   : > { %s438_s26 = sshll.u32 (!%p117_p9), %s669_s13, 4  ;;  %s135_s17 = sand.u32 (!%p117_p9), 1, %s621_s10  }
   0xe   : > { %120 = sbr.rel (%p117_p9) target bundleno = 244 (0xf4), region = 28  ;;  %p139_p10 = scmp.lt.s32.totalorder (!%p117_p9), %s438_s26, 31 }
   0xf   : > { %s437_s21 = sshll.u32 (!%p117_p9), %s135_s17, 7  ;;  %s477_s23 = sshll.u32 (!%p117_p9), %s669_s13, 7 }
  0x10   : > { %s849_s22 = scalar_lea.vmem (!%p117_p9), [#allocation2], %s437_s21  ;;  %s356_s13 = scalar_lea.sflag (!%p117_p9), [#allocation3], %s135_s17 }
  0x11   : > { %s368_s27 = sshll.u32 (!%p117_p9), %s849_s22, 4  ;;  %s369_s27 = int_to_ptr.vmem [resolvable:$true] %s368_s27 }
  0x13   : > { %v176_v0 = vld [vmem:[%s902_s1 + $0x78] sm:$0xff]  ;;  %vm177_vm0 = vcmask 130048   ;;  %v175_v1 = vld [vmem:[%s902_s1 + $0x70] sm:$0xff]  ;;  %v174_v2 = vld [vmem:[%s902_s1 + $0x68] sm:$0xff]  ;;  %s911_s26 = smov (!%p139_p10, %s438_s26), 31 }
  0x14   : > { %479 = vmatpush.xpose.msk.msra.mxu2 %vm177_vm0, %v176_v0  ;;  %480 = vmatpush.xpose.msk.msra.mxu3 %vm177_vm0, %v176_v0  ;;  %v173_v3 = vld [vmem:[%s902_s1 + $0x60] sm:$0xff]  ;;  %v172_v4 = vld [vmem:[%s902_s1 + $0x58] sm:$0xff]  ;;  %v171_v5 = vld [vmem:[%s902_s1 + $0x50] sm:$0xff]  ;;  %s439_s5 = sshll.u32 %s911_s26, 3  ;;  %s367_s26 = scalar_lea.hbm %s903_s2, %s477_s23 }
  0x15   : > { %440 = vmatpush.xpose.msk.msra.mxu0 %vm177_vm0, %v176_v0  ;;  %478 = vmatpush.xpose.msk.msra.mxu1 %vm177_vm0, %v176_v0  ;;  %v170_v6 = vld [vmem:[%s902_s1 + $0x48] sm:$0xff]  ;;  %v169_v7 = vld [vmem:[%s902_s1 + $0x40] sm:$0xff]  ;;  %v168_v8 = vld [vmem:[%s902_s1 + $0x38] sm:$0xff]  ;;  %s808_s16 = scalar_lea.vmem %s901_s0, %s439_s5  ;;  %s370_s28 = sshll.u32 %s367_s26, 4  ;;  %s371_s28 = int_to_ptr.hbm [resolvable:$true] %s370_s28 }
  0x16   : > { %v167_v9 = vld [vmem:[%s902_s1 + $0x30] sm:$0xff]  ;;  %v166_v10 = vld [vmem:[%s902_s1 + $0x28] sm:$0xff]  ;;  %v165_v11 = vld [vmem:[%s902_s1 + $0x20] sm:$0xff]  ;;  %s581_s29 = sshra.s32 %s371_s28, 4  ;;  %s587_s5 = scalar_lea.hbm %s903_s2, 256  ;;  %s582_s29 = int_to_ptr.hbm [resolvable:$true] %s581_s29 }
  0x17   : > { %v164_v12 = vld [vmem:[%s902_s1 + $0x18] sm:$0xff]  ;;  %v163_v13 = vld [vmem:[%s902_s1 + $0x10] sm:$0xff]  ;;  %v162_v14 = vld [vmem:[%s902_s1 + $0x8] sm:$0xff]  ;;  %s583_s30 = scalar_lea.hbm %s582_s29, 128  ;;  %p588_p0 = scmp.lt.s32.totalorder %s582_s29, %s903_s2 }
  0x18   : > { %482 = vmatpush.xpose.msk.msra.mxu2 %vm177_vm0, %v175_v1  ;;  %483 = vmatpush.xpose.msk.msra.mxu3 %vm177_vm0, %v175_v1  ;;  %v161_v15 = vld [vmem:[%s902_s1] sm:$0xff]  ;;  %v154_v20 = vld [vmem:[%s808_s16 + $0x48] sm:$0xff]  ;;  %v155_v24 = vld [vmem:[%s808_s16 + $0x50] sm:$0xff]  ;;  %p584_p11 = scmp.ne.s32.totalorder %s582_s29, %s583_s30  ;;  %p589_p1 = scmp.lt.s32.totalorder %s587_s5, %s583_s30 }
  0x19   : > { %441 = vmatpush.xpose.msk.msra.mxu0 %vm177_vm0, %v175_v1  ;;  %481 = vmatpush.xpose.msk.msra.mxu1 %vm177_vm0, %v175_v1  ;;  %v153_v16 = vld [vmem:[%s808_s16 + $0x40] sm:$0xff]  ;;  %v158_v21 = vld [vmem:[%s808_s16 + $0x68] sm:$0xff]  ;;  %v159_v25 = vld [vmem:[%s808_s16 + $0x70] sm:$0xff] }
  0x1a   : > { %v157_v17 = vld [vmem:[%s808_s16 + $0x60] sm:$0xff]  ;;  %v146_v22 = vld [vmem:[%s808_s16 + $0x8] sm:$0xff]  ;;  %v147_v26 = vld [vmem:[%s808_s16 + $0x10] sm:$0xff]  ;;  %p585_p12 = pnand %p584_p11, %p686_p5  ;;  %p590_p2 = por %p589_p1, %p588_p0 }
  0x1b   : > { %v145_v18 = vld [vmem:[%s808_s16] sm:$0xff]  ;;  %v150_v23 = vld [vmem:[%s808_s16 + $0x28] sm:$0xff]  ;;  %v151_v27 = vld [vmem:[%s808_s16 + $0x30] sm:$0xff] }
  0x1c   : > { %485 = vmatpush.xpose.msk.msra.mxu2 %vm177_vm0, %v174_v2  ;;  %486 = vmatpush.xpose.msk.msra.mxu3 %vm177_vm0, %v174_v2  ;;  %v149_v19 = vld [vmem:[%s808_s16 + $0x20] sm:$0xff]  ;;  %v156_v28 = vld [vmem:[%s808_s16 + $0x58] sm:$0xff]  ;;  %p586_p13 = pneg %p585_p12 }
  0x1d   : > { %442 = vmatpush.xpose.msk.msra.mxu0 %vm177_vm0, %v174_v2  ;;  %484 = vmatpush.xpose.msk.msra.mxu1 %vm177_vm0, %v174_v2  ;;  %v160_v29 = vld [vmem:[%s808_s16 + $0x78] sm:$0xff] }
  0x1e   : > { %v148_v30 = vld [vmem:[%s808_s16 + $0x18] sm:$0xff]  ;;  %p591_p3 = pnand %p590_p2, %p586_p13 }
  0x1f   : > { %v152_v31 = vld [vmem:[%s808_s16 + $0x38] sm:$0xff] }
  0x20   : > { %488 = vmatpush.xpose.msk.msra.mxu2 %vm177_vm0, %v173_v3  ;;  %489 = vmatpush.xpose.msk.msra.mxu3 %vm177_vm0, %v173_v3 }
  0x21   : > { %443 = vmatpush.xpose.msk.msra.mxu0 %vm177_vm0, %v173_v3  ;;  %487 = vmatpush.xpose.msk.msra.mxu1 %vm177_vm0, %v173_v3 }
  0x24   : > { %491 = vmatpush.xpose.msk.msra.mxu2 %vm177_vm0, %v172_v4  ;;  %492 = vmatpush.xpose.msk.msra.mxu3 %vm177_vm0, %v172_v4 }
  0x25   : > { %444 = vmatpush.xpose.msk.msra.mxu0 %vm177_vm0, %v172_v4  ;;  %490 = vmatpush.xpose.msk.msra.mxu1 %vm177_vm0, %v172_v4 }
  0x28   : > { %494 = vmatpush.xpose.msk.msra.mxu2 %vm177_vm0, %v171_v5  ;;  %495 = vmatpush.xpose.msk.msra.mxu3 %vm177_vm0, %v171_v5 }
  0x29   : > { %445 = vmatpush.xpose.msk.msra.mxu0 %vm177_vm0, %v171_v5  ;;  %493 = vmatpush.xpose.msk.msra.mxu1 %vm177_vm0, %v171_v5 }
  0x2c   : > { %497 = vmatpush.xpose.msk.msra.mxu2 %vm177_vm0, %v170_v6  ;;  %498 = vmatpush.xpose.msk.msra.mxu3 %vm177_vm0, %v170_v6 }
  0x2d   : > { %446 = vmatpush.xpose.msk.msra.mxu0 %vm177_vm0, %v170_v6  ;;  %496 = vmatpush.xpose.msk.msra.mxu1 %vm177_vm0, %v170_v6 }
  0x30   : > { %500 = vmatpush.xpose.msk.msra.mxu2 %vm177_vm0, %v169_v7  ;;  %501 = vmatpush.xpose.msk.msra.mxu3 %vm177_vm0, %v169_v7 }
  0x31   : > { %447 = vmatpush.xpose.msk.msra.mxu0 %vm177_vm0, %v169_v7  ;;  %499 = vmatpush.xpose.msk.msra.mxu1 %vm177_vm0, %v169_v7 }
  0x34   : > { %503 = vmatpush.xpose.msk.msra.mxu2 %vm177_vm0, %v168_v8  ;;  %504 = vmatpush.xpose.msk.msra.mxu3 %vm177_vm0, %v168_v8 }
  0x35   : > { %448 = vmatpush.xpose.msk.msra.mxu0 %vm177_vm0, %v168_v8  ;;  %502 = vmatpush.xpose.msk.msra.mxu1 %vm177_vm0, %v168_v8 }
  0x38   : > { %506 = vmatpush.xpose.msk.msra.mxu2 %vm177_vm0, %v167_v9  ;;  %507 = vmatpush.xpose.msk.msra.mxu3 %vm177_vm0, %v167_v9 }
  0x39   : > { %449 = vmatpush.xpose.msk.msra.mxu0 %vm177_vm0, %v167_v9  ;;  %505 = vmatpush.xpose.msk.msra.mxu1 %vm177_vm0, %v167_v9 }
  0x3c   : > { %509 = vmatpush.xpose.msk.msra.mxu2 %vm177_vm0, %v166_v10  ;;  %510 = vmatpush.xpose.msk.msra.mxu3 %vm177_vm0, %v166_v10 }
  0x3d   : > { %450 = vmatpush.xpose.msk.msra.mxu0 %vm177_vm0, %v166_v10  ;;  %508 = vmatpush.xpose.msk.msra.mxu1 %vm177_vm0, %v166_v10 }
  0x40   : > { %512 = vmatpush.xpose.msk.msra.mxu2 %vm177_vm0, %v165_v11  ;;  %513 = vmatpush.xpose.msk.msra.mxu3 %vm177_vm0, %v165_v11 }
  0x41   : > { %451 = vmatpush.xpose.msk.msra.mxu0 %vm177_vm0, %v165_v11  ;;  %511 = vmatpush.xpose.msk.msra.mxu1 %vm177_vm0, %v165_v11 }
  0x44   : > { %515 = vmatpush.xpose.msk.msra.mxu2 %vm177_vm0, %v164_v12  ;;  %516 = vmatpush.xpose.msk.msra.mxu3 %vm177_vm0, %v164_v12 }
  0x45   : > { %452 = vmatpush.xpose.msk.msra.mxu0 %vm177_vm0, %v164_v12  ;;  %514 = vmatpush.xpose.msk.msra.mxu1 %vm177_vm0, %v164_v12 }
  0x48   : > { %518 = vmatpush.xpose.msk.msra.mxu2 %vm177_vm0, %v163_v13  ;;  %519 = vmatpush.xpose.msk.msra.mxu3 %vm177_vm0, %v163_v13 }
  0x49   : > { %453 = vmatpush.xpose.msk.msra.mxu0 %vm177_vm0, %v163_v13  ;;  %517 = vmatpush.xpose.msk.msra.mxu1 %vm177_vm0, %v163_v13 }
  0x4c   : > { %521 = vmatpush.xpose.msk.msra.mxu2 %vm177_vm0, %v162_v14  ;;  %522 = vmatpush.xpose.msk.msra.mxu3 %vm177_vm0, %v162_v14 }
  0x4d   : > { %454 = vmatpush.xpose.msk.msra.mxu0 %vm177_vm0, %v162_v14  ;;  %520 = vmatpush.xpose.msk.msra.mxu1 %vm177_vm0, %v162_v14 }
  0x50   : > { %524 = vmatpush.xpose.msk.msra.mxu2 %vm177_vm0, %v161_v15  ;;  %525 = vmatpush.xpose.msk.msra.mxu3 %vm177_vm0, %v161_v15 }
  0x51   : > { %455 = vmatpush.xpose.msk.msra.mxu0 %vm177_vm0, %v161_v15  ;;  %523 = vmatpush.xpose.msk.msra.mxu1 %vm177_vm0, %v161_v15 }
  0x53   : > { %464 = vmatmul.msk.f32.vlgmr.msra.gmra.mxu2 %vm177_vm0, %v153_v16  ;;  %468 = vmatmul.msk.f32.vlgmr.msra.gmra.mxu3 %vm177_vm0, %v157_v17 }
  0x54   : > { %456 = vmatmul.msk.f32.vlgmr.msra.gmra.mxu0 %vm177_vm0, %v145_v18  ;;  %460 = vmatmul.msk.f32.vlgmr.msra.gmra.mxu1 %vm177_vm0, %v149_v19 }
  0x5b   : > { %465 = vmatmul.msk.f32.gmra.mxu2 %vm177_vm0, %v154_v20  ;;  %469 = vmatmul.msk.f32.gmra.mxu3 %vm177_vm0, %v158_v21 }
  0x5c   : > { %457 = vmatmul.msk.f32.gmra.mxu0 %vm177_vm0, %v146_v22  ;;  %461 = vmatmul.msk.f32.gmra.mxu1 %vm177_vm0, %v150_v23 }
  0x63   : > { %466 = vmatmul.msk.f32.gmra.mxu2 %vm177_vm0, %v155_v24  ;;  %470 = vmatmul.msk.f32.gmra.mxu3 %vm177_vm0, %v159_v25 }
  0x64   : > { %458 = vmatmul.msk.f32.gmra.mxu0 %vm177_vm0, %v147_v26  ;;  %462 = vmatmul.msk.f32.gmra.mxu1 %vm177_vm0, %v151_v27 }
  0x6b   : > { %467 = vmatmul.msk.f32.gmra.mxu2 %vm177_vm0, %v156_v28  ;;  %471 = vmatmul.msk.f32.gmra.mxu3 %vm177_vm0, %v160_v29 }
  0x6c   : > { %459 = vmatmul.msk.f32.gmra.mxu0 %vm177_vm0, %v148_v30  ;;  %463 = vmatmul.msk.f32.gmra.mxu1 %vm177_vm0, %v152_v31 }
  0xd1   : > { %v291_v32 = vpop.f32.mrf.mxu0  ;;  %v303_v33 = vpop.f32.mrf.mxu1 }
  0xd2   : > { %339 = vst [vmem:[%s849_s22] sm:$0xff] %v291_v32 }
  0xd3   : > { %343 = vst [vmem:[%s849_s22 + $0x20] sm:$0xff] %v303_v33 }
  0xd6   : > { %v315_v34 = vpop.f32.mrf.mxu2  ;;  %v327_v35 = vpop.f32.mrf.mxu3 }
  0xd7   : > { %347 = vst [vmem:[%s849_s22 + $0x40] sm:$0xff] %v315_v34 }
  0xd8   : > { %351 = vst [vmem:[%s849_s22 + $0x60] sm:$0xff] %v327_v35 }
  0xd9   : > { %v294_v36 = vpop.f32.mrf.mxu0  ;;  %v306_v37 = vpop.f32.mrf.mxu1 }
  0xda   : > { %340 = vst [vmem:[%s849_s22 + $0x8] sm:$0xff] %v294_v36 }
  0xdb   : > { %344 = vst [vmem:[%s849_s22 + $0x28] sm:$0xff] %v306_v37 }
  0xde   : > { %v318_v38 = vpop.f32.mrf.mxu2  ;;  %v330_v39 = vpop.f32.mrf.mxu3 }
  0xdf   : > { %348 = vst [vmem:[%s849_s22 + $0x48] sm:$0xff] %v318_v38 }
  0xe0   : > { %352 = vst [vmem:[%s849_s22 + $0x68] sm:$0xff] %v330_v39 }
  0xe1   : > { %v297_v40 = vpop.f32.mrf.mxu0  ;;  %v309_v41 = vpop.f32.mrf.mxu1 }
  0xe2   : > { %341 = vst [vmem:[%s849_s22 + $0x10] sm:$0xff] %v297_v40 }
  0xe3   : > { %345 = vst [vmem:[%s849_s22 + $0x30] sm:$0xff] %v309_v41 }
  0xe6   : > { %v321_v42 = vpop.f32.mrf.mxu2  ;;  %v333_v43 = vpop.f32.mrf.mxu3 }
  0xe7   : > { %349 = vst [vmem:[%s849_s22 + $0x50] sm:$0xff] %v321_v42 }
  0xe8   : > { %353 = vst [vmem:[%s849_s22 + $0x70] sm:$0xff] %v333_v43 }
  0xe9   : > { %v300_v44 = vpop.f32.mrf.mxu0  ;;  %v312_v45 = vpop.f32.mrf.mxu1 }
  0xea   : > { %342 = vst [vmem:[%s849_s22 + $0x18] sm:$0xff] %v300_v44 }
  0xeb   : > { %346 = vst [vmem:[%s849_s22 + $0x38] sm:$0xff] %v312_v45 }
  0xee   : > { %v324_v46 = vpop.f32.mrf.mxu2  ;;  %v336_v47 = vpop.f32.mrf.mxu3 }
  0xef   : > { %350 = vst [vmem:[%s849_s22 + $0x58] sm:$0xff] %v324_v46 }
  0xf0   : > { %354 = vst [vmem:[%s849_s22 + $0x78] sm:$0xff] %v336_v47 }
  0xf1   : > { %594 = shalt.err (!%p591_p3)
}
  0xf2   : > { %s631_s8 = smov 128   ;;  %s632_s14 = smov 8  }
  0xf3   : > { %526 = dma.vmem_to_hbm [thread:$0]  (%p686_p5), %s369_s27, 2048, %s371_s28, %s356_s13, %s631_s8, %s631_s8, %s632_s14  }
  0xf4 PF: > { %p532_p4 = scmp.ge.s32.totalorder %s629_s12, 2  ;;  %s385_s16 = sand.u32 1, %s617_s9  }
  0xf5   : > { %s386_s17 = scalar_lea.sflag [#allocation3], %s385_s16 }
  0xf6   : > { %p529_p7 = pnand %p532_p4, %p690_p6 }
  0xf8   : > { %p530_p8 = pneg %p529_p7 }
  0xfa   : > { %612 = dma.done.wait (%p530_p8), %s386_s17, 2048  }
  0xfb   : > { %614 = vsyncadd (%p530_p8), %s386_s17, 4294965248  ;;  %p12_p9 = scmp.ge.s32.totalorder %s673_s15, 4   ;;  %s906_s9 = smov %s621_s10 }
  0xfc   : > { %s907_s10 = smov %s625_s11  ;;  %s908_s11 = smov %s684_s18 }
  0xfd   : > { %s909_s12 = smov %s673_s15  ;;  %14 = sbr.rel (!%p12_p9) target bundleno = 3 (0x3), region = 63 }
 0x102   :  { %392 = vsyncpa [#allocation3], 1 }
 0x103   :  { %394 = vsyncpa [#allocation3 + $0x1], 1 }

</bundles_post_ra>
